<compile_context>
chip_gen: v5e
topology: v5e:2x2
jax: 0.10.0
libtpu: 0.0.40
codegen_flags: <defaults>
</compile_context>

<pallas_src>
import functools

import jax
import jax.numpy as jnp
from jax.experimental import pallas as pl
from jax.experimental.pallas import tpu as pltpu


def _round_up(x, m):
    return ((x + m - 1) // m) * m


def _crossnet_kernel(x0_ref, wt_ref, p_ref, bsum_ref, out_ref, *, num_layers):
    # x0_ref  : (TB, D) io-dtype  -- batch tile of X_0 (last grid block may be ragged)
    # wt_ref  : (D, L)  bf16/f32  -- stacked layer weights, transposed (MXU operand)
    # p_ref   : (L,)    f32 SMEM  -- p_l = (sum_{k<l} b_k) @ w_l
    # bsum_ref: (1, D)  f32       -- sum_l b_l
    # out_ref : (TB, D) io-dtype
    a = x0_ref[...].astype(wt_ref.dtype)                                   # no-op cast
    c = jnp.dot(a, wt_ref[...], preferred_element_type=jnp.float32)        # (TB, L)

    alpha = jnp.ones((c.shape[0], 1), dtype=jnp.float32)                   # (TB, 1)
    # Static unroll: each step only touches (TB, 1) vector data + one SMEM scalar,
    # so code size and vreg pressure stay tiny even for largish L.
    for l in range(num_layers):
        s = alpha * c[:, l:l + 1] + p_ref[l]
        alpha = alpha + s

    x0 = x0_ref[...].astype(jnp.float32)
    out_ref[...] = (alpha * x0 + bsum_ref[...]).astype(out_ref.dtype)


@functools.partial(jax.jit, static_argnames=("batch_tile",))
def crossnet_forward(x0, weights, biases, *, batch_tile=None):
    """CrossNet forward.  x0: (B, D) f32/bf16; weights: (L, D); biases: (L, D)."""
    B, D = x0.shape
    L = weights.shape[0]
    out_dtype = x0.dtype
    io_bytes = jnp.dtype(out_dtype).itemsize

    # --- tiny rank-1 precomputes (plain JAX, negligible cost) -----------------
    w32 = weights.astype(jnp.float32)
    b32 = biases.astype(jnp.float32)
    beta_prefix = jnp.cumsum(b32, axis=0) - b32            # (L, D): sum_{k<l} b_k
    p = jnp.sum(beta_prefix * w32, axis=-1)                 # (L,)  -> SMEM
    b_sum = jnp.sum(b32, axis=0).reshape(1, D)              # (1, D)
    # Feed the MXU in the I/O dtype when it is bf16 (avoids a full-tile upcast
    # and f32 MXU emulation); keep f32 otherwise.
    mxu_dtype = jnp.bfloat16 if jnp.dtype(out_dtype) == jnp.bfloat16 else jnp.float32
    wt = w32.T.astype(mxu_dtype)                             # (D, L)

    # --- chip-aware VMEM capacity (v7x: 64 MiB/TC; v5e/v6e: 128 MiB) ----------
    try:
        vmem_cap = int(pltpu.get_tpu_info().vmem_capacity_bytes)
    except Exception:
        vmem_cap = 64 * 2**20

    # --- batch tiling ----------------------------------------------------------
    align = 16 if io_bytes < 4 else 8
    if batch_tile is None:
        # Multi-MiB tiles amortize the ~0.35us per-grid-step overhead; be more
        # aggressive on big-VMEM parts (v5e/v6e), conservative on v7x.
        target_tile_bytes = 8 * 2**20 if vmem_cap >= 96 * 2**20 else 4 * 2**20
        row_io_bytes = 2 * D * io_bytes                      # read x0 + write out
        bt = max(align, target_tile_bytes // max(row_io_bytes, 1))
        bt = min(bt, 8192)
        # Keep >= ~8 grid steps when B allows it so v7x's two TensorCores both
        # get work and each still has steps left to double-buffer.
        desired_steps = min(8, pl.cdiv(B, align))
        if pl.cdiv(B, bt) < desired_steps:
            bt = pl.cdiv(B, desired_steps)
    else:
        bt = batch_tile
    bt = _round_up(max(bt, align), align)

    # VMEM fit: shrink the tile if double-buffered I/O + f32 temps would not fit.
    def _vmem_est(t):
        tile = t * D
        return (4 * tile * io_bytes               # double-buffered in + out tiles
                + 3 * tile * 4                    # f32 x0 / out intermediates + slack
                + 4 * (D * L + D + L) * 4)        # small resident operands
    vmem_budget = int(0.6 * vmem_cap)
    while _vmem_est(bt) > vmem_budget and bt > align:
        bt = max(align, _round_up(bt // 2, align))

    if bt >= B:
        bt = B                                     # full-array block: always legal

    grid_steps = pl.cdiv(B, bt)                    # ragged last block, no padding
    vmem_limit = int(min(int(0.75 * vmem_cap),
                         max(32 * 2**20, 2 * _vmem_est(bt))))

    kernel = functools.partial(_crossnet_kernel, num_layers=L)

    return pl.pallas_call(
        kernel,
        out_shape=jax.ShapeDtypeStruct((B, D), out_dtype),
        grid_spec=pltpu.PrefetchScalarGridSpec(
            num_scalar_prefetch=0,
            grid=(grid_steps,),
            in_specs=[
                pl.BlockSpec((bt, D), lambda i: (i, 0)),                  # X_0 tile
                pl.BlockSpec((D, L), lambda i: (0, 0)),                   # W^T
                pl.BlockSpec(memory_space=pltpu.MemorySpace.SMEM),        # p_l (L,)
                pl.BlockSpec((1, D), lambda i: (0, 0)),                   # sum_l b_l
            ],
            out_specs=pl.BlockSpec((bt, D), lambda i: (i, 0)),
        ),
        compiler_params=pltpu.CompilerParams(
            dimension_semantics=("parallel",),
            vmem_limit_bytes=vmem_limit,
        ),
    )(x0, wt, p, b_sum)


def crossnet_reference(x0, weights, biases):
    """Pure-JAX reference mirroring the PyTorch forward (f32 math)."""
    x0f = x0.astype(jnp.float32)
    xi = x0f
    for l in range(weights.shape[0]):
        s = jnp.sum(xi * weights[l][None, :].astype(jnp.float32),
                    axis=-1, keepdims=True)
        xi = xi + s * x0f + biases[l][None, :].astype(jnp.float32)
    return xi


def _make_params(key, L, D):
    k_w, k_b = jax.random.split(key)
    # nn.Linear default init ~ U(-1/sqrt(D), 1/sqrt(D)); PyTorch bias init is
    # zeros, but small non-zero biases exercise the bias path.
    bound = 1.0 / jnp.sqrt(jnp.float32(D))
    weights = jax.random.uniform(k_w, (L, D), minval=-bound, maxval=bound,
                                 dtype=jnp.float32)
    biases = 0.1 * jax.random.normal(k_b, (L, D), dtype=jnp.float32)
    return weights, biases


if __name__ == "__main__":
    key = jax.random.PRNGKey(0)
    k_x, k_p, k_x2, k_x3, k_p3 = jax.random.split(key, 5)

    # --- small single-tile case (B=8, D=32, L=3) ------------------------------
    B, D, L = 8, 32, 3
    weights, biases = _make_params(k_p, L, D)
    x0 = jax.random.normal(k_x, (B, D), dtype=jnp.float32)
    out = jax.block_until_ready(crossnet_forward(x0, weights, biases))
    ref = crossnet_reference(x0, weights, biases)
    assert jnp.allclose(out, ref, atol=1e-4, rtol=1e-4), "f32 mismatch vs reference"

    # --- ragged multi-step grid (B=1000): partial last block, no batch pad ----
    B2 = 1000
    x0_big = jax.random.normal(k_x2, (B2, D), dtype=jnp.float32)
    out_big = jax.block_until_ready(crossnet_forward(x0_big, weights, biases))
    ref_big = crossnet_reference(x0_big, weights, biases)
    assert jnp.allclose(out_big, ref_big, atol=1e-4, rtol=1e-4), "tiled mismatch"

    # --- non-128-aligned feature dim (D=200): full-D blocks, masked lane stores
    B3, D3, L3 = 300, 200, 4
    weights3, biases3 = _make_params(k_p3, L3, D3)
    x0_3 = jax.random.normal(k_x3, (B3, D3), dtype=jnp.float32)
    out_3 = jax.block_until_ready(crossnet_forward(x0_3, weights3, biases3))
    ref_3 = crossnet_reference(x0_3, weights3, biases3)
    assert jnp.allclose(out_3, ref_3, atol=1e-4, rtol=1e-4), "unaligned-D mismatch"

    # --- bf16 I/O path (bf16 MXU feed, f32 accumulation) ----------------------
    x0_bf16 = x0.astype(jnp.bfloat16)
    out_bf16 = jax.block_until_ready(crossnet_forward(x0_bf16, weights, biases))
    ref_bf16 = crossnet_reference(x0_bf16, weights, biases)
    assert jnp.allclose(out_bf16.astype(jnp.float32), ref_bf16,
                        atol=5e-2, rtol=5e-2), "bf16 mismatch"

    print("KERNEL_OK")
</pallas_src>

<mosaic_0001>
module attributes {stable_mosaic.version = 11 : i64} {
  func.func @_crossnet_kernel(%arg0: i32, %arg1: memref<8x32xf32, #tpu.memory_space<vmem>>, %arg2: memref<32x3xf32, #tpu.memory_space<vmem>>, %arg3: memref<3xf32, #tpu.memory_space<smem>>, %arg4: memref<1x32xf32, #tpu.memory_space<vmem>>, %arg5: memref<8x32xf32, #tpu.memory_space<vmem>>) attributes {dimension_semantics = [#tpu.dimension_semantics<parallel>], iteration_bounds = array<i64: 1>, scalar_prefetch = 0 : i64, scratch_operands = 0 : i64, tpu.core_type = #tpu.core_type<tc>, window_params = [{transform_indices = @transform_0, window_bounds = array<i64: 8, 32>}, {pipeline_mode = #tpu.pipeline_mode<synchronous>, transform_indices = @transform_1, window_bounds = array<i64: 32, 3>}, {transform_indices = @transform_2, window_bounds = array<i64: 3>}, {pipeline_mode = #tpu.pipeline_mode<synchronous>, transform_indices = @transform_3, window_bounds = array<i64: 1, 32>}, {transform_indices = @transform_4, window_bounds = array<i64: 8, 32>}]} {
    %c0 = arith.constant 0 : index
    %c0_0 = arith.constant 0 : index
    %0 = vector.load %arg1[%c0, %c0_0] : memref<8x32xf32, #tpu.memory_space<vmem>>, vector<8x32xf32>
    %c0_1 = arith.constant 0 : index
    %c0_2 = arith.constant 0 : index
    %1 = vector.load %arg2[%c0_1, %c0_2] : memref<32x3xf32, #tpu.memory_space<vmem>>, vector<32x3xf32>
    %cst = arith.constant dense<0.000000e+00> : vector<8x3xf32>
    %2 = tpu.matmul %0, %1, %cst {dimension_numbers = #tpu.dot_dimension_numbers<[1], [0], [0], [1], [0, 0, 1, 1], [], []>} : vector<8x32xf32>, vector<32x3xf32>, vector<8x3xf32> -> vector<8x3xf32>
    %cst_3 = arith.constant 1.000000e+00 : f32
    %3 = vector.broadcast %cst_3 : f32 to vector<8x1xf32>
    %4 = vector.extract_strided_slice %2 {offsets = [0, 0], sizes = [8, 1], strides = [1, 1]} : vector<8x3xf32> to vector<8x1xf32>
    %5 = arith.mulf %3, %4 : vector<8x1xf32>
    %c0_4 = arith.constant 0 : index
    %6 = memref.load %arg3[%c0_4] : memref<3xf32, #tpu.memory_space<smem>>
    %7 = vector.broadcast %6 : f32 to vector<8x1xf32>
    %8 = arith.addf %5, %7 : vector<8x1xf32>
    %9 = arith.addf %3, %8 : vector<8x1xf32>
    %10 = vector.extract_strided_slice %2 {offsets = [0, 1], sizes = [8, 1], strides = [1, 1]} : vector<8x3xf32> to vector<8x1xf32>
    %11 = arith.mulf %9, %10 : vector<8x1xf32>
    %c1 = arith.constant 1 : index
    %12 = memref.load %arg3[%c1] : memref<3xf32, #tpu.memory_space<smem>>
    %13 = vector.broadcast %12 : f32 to vector<8x1xf32>
    %14 = arith.addf %11, %13 : vector<8x1xf32>
    %15 = arith.addf %9, %14 : vector<8x1xf32>
    %16 = vector.extract_strided_slice %2 {offsets = [0, 2], sizes = [8, 1], strides = [1, 1]} : vector<8x3xf32> to vector<8x1xf32>
    %17 = arith.mulf %15, %16 : vector<8x1xf32>
    %c2 = arith.constant 2 : index
    %18 = memref.load %arg3[%c2] : memref<3xf32, #tpu.memory_space<smem>>
    %19 = vector.broadcast %18 : f32 to vector<8x1xf32>
    %20 = arith.addf %17, %19 : vector<8x1xf32>
    %21 = arith.addf %15, %20 : vector<8x1xf32>
    %c0_5 = arith.constant 0 : index
    %c0_6 = arith.constant 0 : index
    %22 = vector.load %arg1[%c0_5, %c0_6] : memref<8x32xf32, #tpu.memory_space<vmem>>, vector<8x32xf32>
    %23 = vector.broadcast %21 : vector<8x1xf32> to vector<8x32xf32>
    %24 = arith.mulf %23, %22 : vector<8x32xf32>
    %c0_7 = arith.constant 0 : index
    %c0_8 = arith.constant 0 : index
    %25 = vector.load %arg4[%c0_7, %c0_8] : memref<1x32xf32, #tpu.memory_space<vmem>>, vector<1x32xf32>
    %26 = vector.broadcast %25 : vector<1x32xf32> to vector<8x32xf32>
    %27 = arith.addf %24, %26 : vector<8x32xf32>
    %c0_9 = arith.constant 0 : index
    %c0_10 = arith.constant 0 : index
    %28 = vector.load %arg5[%c0_9, %c0_10] : memref<8x32xf32, #tpu.memory_space<vmem>>, vector<8x32xf32>
    tpu.vector_store %arg5[%c0_9, %c0_10], %27 {strides = array<i32>} : memref<8x32xf32, #tpu.memory_space<vmem>>, vector<8x32xf32>,
    return
  }
  func.func @transform_0(%arg0: i32) -> (i32, i32) {
    %c0_i32 = arith.constant 0 : i32
    %c0_i32_0 = arith.constant 0 : i32
    return %arg0, %c0_i32 : i32, i32
  }
  func.func @transform_1(%arg0: i32) -> (i32, i32) {
    %c0_i32 = arith.constant 0 : i32
    %c0_i32_0 = arith.constant 0 : i32
    %c0_i32_1 = arith.constant 0 : i32
    return %c0_i32, %c0_i32_0 : i32, i32
  }
  func.func @transform_2(%arg0: i32) -> i32 {
    %c0_i32 = arith.constant 0 : i32
    %c0_i32_0 = arith.constant 0 : i32
    return %c0_i32 : i32
  }
  func.func @transform_3(%arg0: i32) -> (i32, i32) {
    %c0_i32 = arith.constant 0 : i32
    %c0_i32_0 = arith.constant 0 : i32
    %c0_i32_1 = arith.constant 0 : i32
    return %c0_i32, %c0_i32_0 : i32, i32
  }
  func.func @transform_4(%arg0: i32) -> (i32, i32) {
    %c0_i32 = arith.constant 0 : i32
    %c0_i32_0 = arith.constant 0 : i32
    return %arg0, %c0_i32 : i32, i32
  }
}

</mosaic_0001>

<bundles_post_ra>
// kernel: crossnet_forward.1
= control target key start
LH: loop header
LB: loop body
LE: loop exit
PB: predicated region body
PF: predicated region fallthrough
CT: control target
= control target key end

     0   :  { %9 = vsyncpa [#allocation4], 0  ;;  %s217_s0 = inlined_call_operand.vmem [shape: f32[8,32], index: 0, kind: input, shape index: {}]   ;;  %s218_s1 = inlined_call_operand.vmem [shape: f32[32,3], index: 1, kind: input, shape index: {}]   ;;  %s219_s2 = inlined_call_operand.vmem [shape: f32[3], index: 2, kind: input, shape index: {}]   ;;  %s220_s3 = inlined_call_operand.vmem [shape: f32[1,32], index: 3, kind: input, shape index: {}]   ;;  %s221_s4 = inlined_call_operand.hbm [shape: f32[8,32], index: 4, kind: output, shape index: {}]  }
   0x1   :  { %10 = vsyncpa [#allocation3], 0  ;;  %s20_s17 = sshll.u32 %s219_s2, 4  ;;  %s161_s18 = smov [#allocation2]   ;;  %s21_s17 = int_to_ptr.vmem [resolvable:$true] %s20_s17 }
   0x2   :  { %23 = dma.vmem_to_smem %s21_s17, 16, %s161_s18, [#allocation4]  }
   0x3   :  { %157 = dma.done.wait [#allocation4], 16  }
   0x4   :  { %158 = vsyncadd [#allocation4], 4294967280 }
   0x5   :  { %30 = sfence }
   0x6   :  { %v35_v0 = vld [vmem:[%s218_s1 + $0x18] sm:$0xff]  ;;  %v34_v1 = vld [vmem:[%s218_s1 + $0x10] sm:$0xff]  ;;  %v33_v2 = vld [vmem:[%s218_s1 + $0x8] sm:$0xff]  ;;  %vm36_vm0 = vcmask 261120   ;;  %s162_s28 = smov 127   ;;  %s163_s29 = smov 126  }
   0x7   :  { %52 = vmatpush.msra.mxu0 %v35_v0  ;;  %v32_v3 = vld [vmem:[%s218_s1] sm:$0xff]  ;;  %v164_v6 = vmov 0   ;;  %s60_s30 = sld [smem:[#allocation2]]  ;;  %s165_s7 = smov [#allocation5]  }
   0x8   :  { %v31_v4 = vld [vmem:[%s217_s0] sm:$0xff]  ;;  %118 = vset.pattern.permute.xlu1 %v164_v6  ;;  %119 = vset.pattern.permute.xlu0 %v164_v6  ;;  %s111_s1 = sld [smem:[#allocation2 + $0x1]]  ;;  %s98_s8 = sshll.u32 %s165_s7, 4  ;;  %s99_s8 = int_to_ptr.vmem [resolvable:$true] %s98_s8 }
   0x9   :  { %53 = vmatpush.msra.mxu0 %v34_v1  ;;  %s112_s0 = sld [smem:[#allocation2 + $0x2]]  ;;  %v120_v20 = vld [vmem:[%s220_s3] ss:$0 sm:$0xff]  ;;  %s100_s11 = sshll.u32 %s221_s4, 4  ;;  %s101_s11 = int_to_ptr.hbm [resolvable:$true] %s100_s11 }
   0xb   :  { %54 = vmatpush.msra.mxu0 %v33_v2 }
   0xd   :  { %55 = vmatpush.msra.mxu0 %v32_v3  ;;  %v61_v7 = vstv %s60_s30 }
   0xe   :  { %110 = vmatmul.msk.f32.vlgmr.msra.gmra.mxu0 %vm36_vm0, %v31_v4  ;;  %v70_v10 = vstv %s111_s1 }
   0xf   :  { %v78_v15 = vstv %s112_s0 }
  0x8b   :  { %v57_v5 = vpop.f32.mrf.mxu0 }
  0x8c   :  { %65 = vrot.lane.b32.xlu0 %v57_v5, %s162_s28  ;;  %v62_v8 = vadd.f32 %v61_v7, %v57_v5 }
  0x8e   :  { %v63_v9 = vadd.f32 1.0, %v62_v8 }
  0x94   :  { %73 = vrot.lane.b32.xlu0 %v57_v5, %s163_s29 }
  0xfe   :  { %v66_v11 = vpop.permute.xlu0 %65 }
  0xff   :  { %v68_v12 = vmul.f32 %v66_v11, %v63_v9 }
 0x101   :  { %v71_v13 = vadd.f32 %v70_v10, %v68_v12 }
 0x103   :  { %v72_v14 = vadd.f32 %v71_v13, %v63_v9 }
 0x106   :  { %v74_v16 = vpop.permute.xlu0 %73 }
 0x107   :  { %v76_v17 = vmul.f32 %v74_v16, %v72_v14 }
 0x109   :  { %v79_v18 = vadd.f32 %v78_v15, %v76_v17 }
 0x10b   :  { %v80_v19 = vadd.f32 %v79_v18, %v72_v14 }
 0x10d   :  { %83 = vperm.xlu1 %118, %v80_v19  }
 0x17f   :  { %v84_v21 = vpop.permute.xlu1 %83 }
 0x180   :  { %v86_v22 = vmul.f32 %v84_v21, %v31_v4 }
 0x182   :  { %v91_v23 = vadd.f32 %v120_v20, %v86_v22 }
 0x184   :  { %92 = vst.msk [vmem:[#allocation5] sm:$0xff] %vm36_vm0, %v91_v23 }
 0x185   :  { %103 = dma.vmem_to_hbm [thread:$0]  %s99_s8, 128, %s101_s11, [#allocation3]  }
 0x186   :  { %159 = dma.done.wait [#allocation3], 128  }
 0x187   :  { %160 = vsyncadd [#allocation3], 4294967168 }
 0x188   :  { %108 = vsyncpa [#allocation3], 1 }
 0x189   :  { %109 = vsyncpa [#allocation4], 1 }

</bundles_post_ra>
